<compile_context>
chip_gen: v5e
topology: v5e:2x2
jax: 0.10.0
libtpu: 0.0.40
codegen_flags: <defaults>
</compile_context>

<pallas_src>
import jax
import jax.numpy as jnp
from jax.experimental import pallas as pl
from jax.experimental.pallas import tpu as pltpu


# ----------------------------------------------------------------------------- #
# Kernel: 3 fused matmuls per batch tile (fc1+conv1 | conv2 | fc2).
# ----------------------------------------------------------------------------- #
def cnnpred_kernel(x_ref, wf_ref, bf_ref, wc2_ref, cb2_ref, w2_ref, b2_ref,
                   out_ref):
    zero = jnp.float32(0.0)
    # fused fc1 + conv1 (reflect-pad taps folded into the weight) + bias + ReLU
    h = jnp.maximum(
        jnp.dot(x_ref[...], wf_ref[...],
                preferred_element_type=jnp.float32) + bf_ref[...], zero)
    # conv2 + ReLU (bf16 MXU push, f32 accumulate / elementwise)
    h = jnp.maximum(
        jnp.dot(h.astype(wc2_ref.dtype), wc2_ref[...],
                preferred_element_type=jnp.float32) + cb2_ref[...], zero)
    # fc2 on the packed (position-major) activations
    out = jnp.dot(h.astype(w2_ref.dtype), w2_ref[...],
                  preferred_element_type=jnp.float32) + b2_ref[...]
    out_ref[...] = out.astype(out_ref.dtype)


def _round_up(n, m):
    return ((n + m - 1) // m) * m


def _const_spec(a):
    zeros = (0,) * a.ndim
    return pl.BlockSpec(a.shape, lambda i, _z=zeros: _z)


# ----------------------------------------------------------------------------- #
# Wrapper: batch-tiled pallas_call.
# ----------------------------------------------------------------------------- #
def cnnpred_forward(x, packed, *, tile_b=4096):
    """x: (B, 3, C_in) float32.  Returns (B, 5, 4) float32 (output_size == 20)."""
    wf, bf, wc2, cb2, w2p, b2 = packed
    B, L, C = x.shape
    assert L == 3, "CNNPred requires seq_len == 3 (fc2 expects hidden*3 inputs)"
    C3 = L * C
    H3 = wf.shape[-1]
    O = b2.shape[-1]

    # Lane-dense, sublane-friendly input layout; bf16 halves DMA bytes.
    x2 = x.reshape(B, C3).astype(jnp.bfloat16)

    # Batch tile: large (amortize per-step overhead), multiple of 8, but keep
    # >= 2 grid steps when the batch allows (v7x megacore sharding on the
    # "parallel" axis).
    tile_b = max(8, min(int(tile_b), _round_up(B, 8)))
    if pl.cdiv(B, tile_b) < 2 and B >= 16:
        tile_b = _round_up(pl.cdiv(B, 2), 8)
    grid = (pl.cdiv(B, tile_b),)   # ragged last block masked by Pallas; no pad

    flops = 2 * B * (C3 * H3 + H3 * H3 + H3 * O)
    bytes_accessed = (2 * (B * C3 + wf.size + wc2.size + w2p.size)   # bf16
                      + 4 * (B * O + bf.size + cb2.size + b2.size))  # f32

    out = pl.pallas_call(
        cnnpred_kernel,
        out_shape=jax.ShapeDtypeStruct((B, O), jnp.float32),
        grid=grid,
        in_specs=[
            # Batch-tiled input stream (default double buffering).
            pl.BlockSpec((tile_b, C3), lambda i: (i, 0)),
            # Weights/biases: constant index maps -> VMEM-resident across tiles.
            _const_spec(wf), _const_spec(bf),
            _const_spec(wc2), _const_spec(cb2),
            _const_spec(w2p), _const_spec(b2),
        ],
        out_specs=pl.BlockSpec((tile_b, O), lambda i: (i, 0)),
        compiler_params=pltpu.CompilerParams(
            dimension_semantics=("parallel",),
            vmem_limit_bytes=32 * 1024 * 1024),
        cost_estimate=pl.CostEstimate(
            flops=flops, transcendentals=0, bytes_accessed=bytes_accessed),
    )(x2, wf, bf, wc2, cb2, w2p, b2)

    return out.reshape(-1, 5, 4)


# ----------------------------------------------------------------------------- #
# Parameter construction (torch layout) + host-side packing into fused weights.
# ----------------------------------------------------------------------------- #
def init_params(key, in_channels, hidden, output_size):
    """Deterministic synthetic params in PyTorch layouts."""
    ks = jax.random.split(key, 8)

    def u(k, shape, fan_in):
        bound = 1.0 / (fan_in ** 0.5)
        return jax.random.uniform(k, shape, jnp.float32, -bound, bound)

    return dict(
        w1=u(ks[0], (hidden, in_channels), in_channels),       # fc1.weight (H, C)
        b1=u(ks[1], (hidden,), in_channels),                    # fc1.bias   (H,)
        cw1=u(ks[2], (hidden, hidden, 3), hidden * 3),          # conv1.weight (H,H,3)
        cb1=u(ks[3], (hidden,), hidden * 3),
        cw2=u(ks[4], (hidden, hidden, 3), hidden * 3),          # conv2.weight (H,H,3)
        cb2=u(ks[5], (hidden,), hidden * 3),
        w2=u(ks[6], (output_size, 3 * hidden), 3 * hidden),     # fc2.weight (O, 3H)
        b2=u(ks[7], (output_size,), 3 * hidden),
    )


def pack_params(tp):
    """Fold per-position / per-tap structure into 3 dense matmul weights.

    fc1 is fused into conv1 (no nonlinearity between them):
        relu(x @ Wf + bf),  Wf = blockdiag(W1,W1,W1) @ Wc1,  bf = b1_tiled @ Wc1 + cb1
    Matmul weights are returned in bf16; biases stay f32.
    """
    H, C = tp["w1"].shape
    O = tp["w2"].shape[0]
    f32 = jnp.float32

    # fc1: (C, H) replicated block-diagonally -> (3C, 3H)
    w1 = tp["w1"].T.astype(f32)
    zc = jnp.zeros((C, H), f32)
    w1_blk = jnp.block([[w1, zc, zc], [zc, w1, zc], [zc, zc, w1]])
    b1 = jnp.tile(tp["b1"].astype(f32), 3)                     # (3H,)

    # conv (kernel=3, padding=1, reflect) as a single (3H, 3H) matmul:
    #   y0 = a0@w1 + a1@(w0+w2);  y1 = a0@w0 + a1@w1 + a2@w2;  y2 = a1@(w0+w2) + a2@w1
    def conv_pack(cw, cb):
        wk = [cw[:, :, k].T.astype(f32) for k in range(3)]      # (H_in, H_out) per tap
        w02 = wk[0] + wk[2]
        zh = jnp.zeros((H, H), f32)
        wblk = jnp.block([
            [wk[1], wk[0], zh],      # contribution of a0 to (y0, y1, y2)
            [w02,   wk[1], w02],     # contribution of a1
            [zh,    wk[2], wk[1]],   # contribution of a2
        ])
        return wblk, jnp.tile(cb.astype(f32), 3)

    wc1, cb1 = conv_pack(tp["cw1"], tp["cb1"])
    wc2, cb2 = conv_pack(tp["cw2"], tp["cb2"])

    # Fuse fc1 into conv1.
    wf = w1_blk @ wc1                                           # (3C, 3H)
    bf = b1 @ wc1 + cb1                                         # (3H,)

    # fc2: torch flatten is channel-major (col = c*3 + t); activations are packed
    # position-major (lane = t*H + c) -> reorder columns of fc2.weight.
    w2p = jnp.transpose(tp["w2"].reshape(O, H, 3), (2, 1, 0)).reshape(3 * H, O)

    bf16 = jnp.bfloat16
    return (wf.astype(bf16), bf[None, :].astype(f32),
            wc2.astype(bf16), cb2[None, :].astype(f32),
            w2p.astype(bf16), tp["b2"][None, :].astype(f32))


# ----------------------------------------------------------------------------- #
# Pure-JAX reference replicating the PyTorch forward (for verification).
# ----------------------------------------------------------------------------- #
def reference_forward(x, tp):
    B = x.shape[0]
    h = x @ tp["w1"].T + tp["b1"]                 # (B, 3, H)
    h = jnp.transpose(h, (0, 2, 1))               # (B, H, 3)  NCL, as in PyTorch

    def conv(h_ncl, w, b):
        hp = jnp.pad(h_ncl, ((0, 0), (0, 0), (1, 1)), mode="reflect")    # (B,H,5)
        taps = jnp.stack([hp[:, :, t:t + 3] for t in range(3)], axis=2)  # (B,Hin,t,k)
        out = jnp.einsum("bitk,oik->bot", taps, w) + b[None, :, None]
        return jnp.maximum(out, 0.0)

    h = conv(h, tp["cw1"], tp["cb1"])
    h = conv(h, tp["cw2"], tp["cb2"])
    flat = h.reshape(B, -1)                       # channel-major flatten: c*3 + t
    out = flat @ tp["w2"].T + tp["b2"]
    return out.reshape(-1, 5, 4)


if __name__ == "__main__":
    # seq_len = 3 and output_size = 20 are fixed by the model definition.
    B, C_IN, HIDDEN, OUT = 32, 16, 32, 20
    key = jax.random.PRNGKey(0)
    kx, kp = jax.random.split(key)
    x = jax.random.normal(kx, (B, 3, C_IN), jnp.float32)
    tp = init_params(kp, C_IN, HIDDEN, OUT)
    packed = pack_params(tp)

    # Default tile_b: at this small B the wrapper clamps the tile and splits the
    # batch into a 2-step parallel grid (exercises multi-step + v7x sharding path).
    out = jax.block_until_ready(cnnpred_forward(x, packed))
    ref = reference_forward(x, tp)

    assert out.shape == (B, 5, 4), out.shape
    # bf16 matmul inputs (f32 accumulate) -> slightly looser tolerance than f32.
    if not bool(jnp.allclose(out, ref, atol=5e-2, rtol=5e-2)):
        raise AssertionError("Pallas kernel output does not match JAX reference")
    print("KERNEL_OK")
</pallas_src>

<mosaic_0001>
module attributes {stable_mosaic.version = 11 : i64} {
  func.func @cnnpred_kernel(%arg0: i32, %arg1: memref<16x48xbf16, #tpu.memory_space<vmem>>, %arg2: memref<48x96xbf16, #tpu.memory_space<vmem>>, %arg3: memref<1x96xf32, #tpu.memory_space<vmem>>, %arg4: memref<96x96xbf16, #tpu.memory_space<vmem>>, %arg5: memref<1x96xf32, #tpu.memory_space<vmem>>, %arg6: memref<96x20xbf16, #tpu.memory_space<vmem>>, %arg7: memref<1x20xf32, #tpu.memory_space<vmem>>, %arg8: memref<16x20xf32, #tpu.memory_space<vmem>>) attributes {dimension_semantics = [#tpu.dimension_semantics<parallel>], iteration_bounds = array<i64: 2>, scalar_prefetch = 0 : i64, scratch_operands = 0 : i64, tpu.core_type = #tpu.core_type<tc>, window_params = [{transform_indices = @transform_0, window_bounds = array<i64: 16, 48>}, {pipeline_mode = #tpu.pipeline_mode<synchronous>, transform_indices = @transform_1, window_bounds = array<i64: 48, 96>}, {pipeline_mode = #tpu.pipeline_mode<synchronous>, transform_indices = @transform_2, window_bounds = array<i64: 1, 96>}, {pipeline_mode = #tpu.pipeline_mode<synchronous>, transform_indices = @transform_3, window_bounds = array<i64: 96, 96>}, {pipeline_mode = #tpu.pipeline_mode<synchronous>, transform_indices = @transform_4, window_bounds = array<i64: 1, 96>}, {pipeline_mode = #tpu.pipeline_mode<synchronous>, transform_indices = @transform_5, window_bounds = array<i64: 96, 20>}, {pipeline_mode = #tpu.pipeline_mode<synchronous>, transform_indices = @transform_6, window_bounds = array<i64: 1, 20>}, {transform_indices = @transform_7, window_bounds = array<i64: 16, 20>}]} {
    %c0 = arith.constant 0 : index
    %c0_0 = arith.constant 0 : index
    %0 = vector.load %arg1[%c0, %c0_0] : memref<16x48xbf16, #tpu.memory_space<vmem>>, vector<16x48xbf16>
    %c0_1 = arith.constant 0 : index
    %c0_2 = arith.constant 0 : index
    %1 = vector.load %arg2[%c0_1, %c0_2] : memref<48x96xbf16, #tpu.memory_space<vmem>>, vector<48x96xbf16>
    %cst = arith.constant dense<0.000000e+00> : vector<16x96xf32>
    %2 = tpu.matmul %0, %1, %cst {dimension_numbers = #tpu.dot_dimension_numbers<[1], [0], [0], [1], [0, 0, 1, 1], [], []>} : vector<16x48xbf16>, vector<48x96xbf16>, vector<16x96xf32> -> vector<16x96xf32>
    %c0_3 = arith.constant 0 : index
    %c0_4 = arith.constant 0 : index
    %3 = vector.load %arg3[%c0_3, %c0_4] : memref<1x96xf32, #tpu.memory_space<vmem>>, vector<1x96xf32>
    %4 = vector.broadcast %3 : vector<1x96xf32> to vector<16x96xf32>
    %5 = arith.addf %2, %4 : vector<16x96xf32>
    %cst_5 = arith.constant 0.000000e+00 : f32
    %6 = vector.broadcast %cst_5 : f32 to vector<16x96xf32>
    %7 = arith.maximumf %5, %6 : vector<16x96xf32>
    %8 = arith.truncf %7 : vector<16x96xf32> to vector<16x96xbf16>
    %c0_6 = arith.constant 0 : index
    %c0_7 = arith.constant 0 : index
    %9 = vector.load %arg4[%c0_6, %c0_7] : memref<96x96xbf16, #tpu.memory_space<vmem>>, vector<96x96xbf16>
    %cst_8 = arith.constant dense<0.000000e+00> : vector<16x96xf32>
    %10 = tpu.matmul %8, %9, %cst_8 {dimension_numbers = #tpu.dot_dimension_numbers<[1], [0], [0], [1], [0, 0, 1, 1], [], []>} : vector<16x96xbf16>, vector<96x96xbf16>, vector<16x96xf32> -> vector<16x96xf32>
    %c0_9 = arith.constant 0 : index
    %c0_10 = arith.constant 0 : index
    %11 = vector.load %arg5[%c0_9, %c0_10] : memref<1x96xf32, #tpu.memory_space<vmem>>, vector<1x96xf32>
    %12 = vector.broadcast %11 : vector<1x96xf32> to vector<16x96xf32>
    %13 = arith.addf %10, %12 : vector<16x96xf32>
    %cst_11 = arith.constant 0.000000e+00 : f32
    %14 = vector.broadcast %cst_11 : f32 to vector<16x96xf32>
    %15 = arith.maximumf %13, %14 : vector<16x96xf32>
    %16 = arith.truncf %15 : vector<16x96xf32> to vector<16x96xbf16>
    %c0_12 = arith.constant 0 : index
    %c0_13 = arith.constant 0 : index
    %17 = vector.load %arg6[%c0_12, %c0_13] : memref<96x20xbf16, #tpu.memory_space<vmem>>, vector<96x20xbf16>
    %cst_14 = arith.constant dense<0.000000e+00> : vector<16x20xf32>
    %18 = tpu.matmul %16, %17, %cst_14 {dimension_numbers = #tpu.dot_dimension_numbers<[1], [0], [0], [1], [0, 0, 1, 1], [], []>} : vector<16x96xbf16>, vector<96x20xbf16>, vector<16x20xf32> -> vector<16x20xf32>
    %c0_15 = arith.constant 0 : index
    %c0_16 = arith.constant 0 : index
    %19 = vector.load %arg7[%c0_15, %c0_16] : memref<1x20xf32, #tpu.memory_space<vmem>>, vector<1x20xf32>
    %20 = vector.broadcast %19 : vector<1x20xf32> to vector<16x20xf32>
    %21 = arith.addf %18, %20 : vector<16x20xf32>
    %c0_17 = arith.constant 0 : index
    %c0_18 = arith.constant 0 : index
    %22 = vector.load %arg8[%c0_17, %c0_18] : memref<16x20xf32, #tpu.memory_space<vmem>>, vector<16x20xf32>
    tpu.vector_store %arg8[%c0_17, %c0_18], %21 {strides = array<i32>} : memref<16x20xf32, #tpu.memory_space<vmem>>, vector<16x20xf32>,
    return
  }
  func.func @transform_0(%arg0: i32) -> (i32, i32) {
    %c0_i32 = arith.constant 0 : i32
    %c0_i32_0 = arith.constant 0 : i32
    return %arg0, %c0_i32 : i32, i32
  }
  func.func @transform_1(%arg0: i32) -> (i32, i32) {
    %c0_i32 = arith.constant 0 : i32
    %c0_i32_0 = arith.constant 0 : i32
    %c0_i32_1 = arith.constant 0 : i32
    return %c0_i32, %c0_i32_0 : i32, i32
  }
  func.func @transform_2(%arg0: i32) -> (i32, i32) {
    %c0_i32 = arith.constant 0 : i32
    %c0_i32_0 = arith.constant 0 : i32
    %c0_i32_1 = arith.constant 0 : i32
    return %c0_i32, %c0_i32_0 : i32, i32
  }
  func.func @transform_3(%arg0: i32) -> (i32, i32) {
    %c0_i32 = arith.constant 0 : i32
    %c0_i32_0 = arith.constant 0 : i32
    %c0_i32_1 = arith.constant 0 : i32
    return %c0_i32, %c0_i32_0 : i32, i32
  }
  func.func @transform_4(%arg0: i32) -> (i32, i32) {
    %c0_i32 = arith.constant 0 : i32
    %c0_i32_0 = arith.constant 0 : i32
    %c0_i32_1 = arith.constant 0 : i32
    return %c0_i32, %c0_i32_0 : i32, i32
  }
  func.func @transform_5(%arg0: i32) -> (i32, i32) {
    %c0_i32 = arith.constant 0 : i32
    %c0_i32_0 = arith.constant 0 : i32
    %c0_i32_1 = arith.constant 0 : i32
    return %c0_i32, %c0_i32_0 : i32, i32
  }
  func.func @transform_6(%arg0: i32) -> (i32, i32) {
    %c0_i32 = arith.constant 0 : i32
    %c0_i32_0 = arith.constant 0 : i32
    %c0_i32_1 = arith.constant 0 : i32
    return %c0_i32, %c0_i32_0 : i32, i32
  }
  func.func @transform_7(%arg0: i32) -> (i32, i32) {
    %c0_i32 = arith.constant 0 : i32
    %c0_i32_0 = arith.constant 0 : i32
    return %arg0, %c0_i32 : i32, i32
  }
}

</mosaic_0001>

<bundles_post_ra>
// kernel: tpu_custom_call.1
= control target key start
LH: loop header
LB: loop body
LE: loop exit
PB: predicated region body
PF: predicated region fallthrough
CT: control target
= control target key end

     0   :  { %12 = vsyncpa [#allocation3], 0  ;;  %s1055_s0 = inlined_call_operand.hbm [shape: bf16[32,48], index: 0, kind: input, shape index: {}]   ;;  %s1056_s1 = inlined_call_operand.hbm [shape: bf16[48,96], index: 1, kind: input, shape index: {}]   ;;  %s1057_s2 = inlined_call_operand.vmem [shape: f32[1,96], index: 2, kind: input, shape index: {}]   ;;  %s1058_s3 = inlined_call_operand.vmem [shape: bf16[96,96], index: 3, kind: input, shape index: {}]   ;;  %s1059_s4 = inlined_call_operand.vmem [shape: f32[1,96], index: 4, kind: input, shape index: {}]   ;;  %s1060_s5 = inlined_call_operand.vmem [shape: bf16[96,20], index: 5, kind: input, shape index: {}]   ;;  %s1061_s6 = inlined_call_operand.vmem [shape: f32[1,20], index: 6, kind: input, shape index: {}]   ;;  %s1062_s7 = inlined_call_operand.vmem [shape: f32[32,20], index: 7, kind: output, shape index: {}]  }
   0x1   :  { %14 = vsyncpa [#allocation3 + $0x1], 0 }
   0x2   :  { %15 = vsyncpa [#allocation5], 0  ;;  %s896_s24 = smov 0   ;;  %s898_s25 = smov 0  }
   0x3   :  { %s900_s26 = smov 0   ;;  %s902_s27 = smov 0  }
   0x4 LB: > { %s1063_s28 = sadd.s32 4294967295, %s851_s27   ;;  %p41_p0 = scmp.ne.s32.totalorder %s843_s25, %s839_s24  ;;  %s851_s27 = sphi %s902_s27, %s1072_s27   ;;  %s847_s26 = sphi %s900_s26, %s1071_s26   ;;  %s843_s25 = sphi %s898_s25, %s1070_s25   ;;  %s839_s24 = sphi %s896_s24, %s1069_s24  }
   0x5   : > { %p918_p1 = scmp.eq.s32.totalorder %s1063_s28, 0  ;;  %p601_p2 = scmp.ge.s32.totalorder %s851_s27, 1 }
   0x6   : > { %p204_p3 = scmp.lt.s32.totalorder %s851_s27, 3  ;;  %s215_s10 = sshll.u32 %s1056_s1, 4  ;;  %s216_s10 = int_to_ptr.hbm [resolvable:$true] %s215_s10 }
   0x7   : > { %p926_p4 = por %p918_p1, %p41_p0  ;;  %s853_s12 = smov [#allocation4]  }
   0x8   : > { %p933_p5 = pnand %p601_p2, %p204_p3  ;;  %s217_s13 = sshll.u32 %s853_s12, 4  ;;  %s218_s13 = int_to_ptr.vmem [resolvable:$true] %s217_s13 }
   0x9   : > { %s942_s14 = sadd.s32 1, %s851_s27   ;;  %s854_s15 = smov 64  }
   0xa   : > { %p704_p6 = pneg %p933_p5  ;;  %s855_s16 = smov 4  }
   0xb   : > { %s25_s17 = ssub.s32 %s851_s27, %s942_s14  ;;  %s28_s18 = sadd.s32 1, %s847_s26 }
   0xc   : > { %p705_p7 = pnand %p704_p6, %p918_p1  ;;  %p26_p8 = scmp.eq.s32.totalorder %s25_s17, 0 }
   0xd   : > { %p35_p9 = scmp.ne.s32.totalorder %s847_s26, %s843_s25  ;;  %p36_p10 = scmp.eq.s32.totalorder %s851_s27, 0 }
   0xe   : > { %707 = dma.hbm_to_vmem [thread:$0]  (!%p705_p7), %s216_s10, 384, %s218_s13, [#allocation5], %s854_s15, %s854_s15, %s855_s16  }
   0xf   : > { %p713_p11 = scmp.lt.s32.totalorder %s851_s27, 2  ;;  %p37_p12 = por %p36_p10, %p35_p9 }
  0x10   : > { %s955_s19 = scalar_select %p26_p8, %s847_s26, %s28_s18  }
  0x11   : > { %s246_s20 = sand.u32 1, %s847_s26   ;;  %s681_s22 = sshll.u32 %s851_s27, 3 }
  0x12   : > { %s604_s21 = sshll.u32 %s246_s20, 3  ;;  %s255_s8 = scalar_lea.hbm %s1055_s0, %s681_s22 }
  0x13   : > { %s250_s9 = scalar_lea.vmem [#allocation2], %s604_s21  ;;  %s256_s28 = sshll.u32 %s255_s8, 4  ;;  %s257_s28 = int_to_ptr.hbm [resolvable:$true] %s256_s28 }
  0x14   : > { %s258_s12 = sshll.u32 %s250_s9, 4  ;;  %p962_p13 = pnand %p713_p11, %p37_p12  ;;  %s259_s12 = int_to_ptr.vmem [resolvable:$true] %s258_s12 }
  0x15   : > { %s247_s13 = scalar_lea.sflag [#allocation3], %s246_s20  ;;  %s783_s17 = sshra.s32 %s257_s28, 4  ;;  %s784_s17 = int_to_ptr.hbm [resolvable:$true] %s783_s17 }
  0x16   : > { %s785_s18 = scalar_lea.hbm %s784_s17, 8  ;;  %p787_p2 = pneg %p962_p13 }
  0x17   : > { %p786_p0 = scmp.ne.s32.totalorder %s784_s17, %s785_s18  ;;  %s790_s23 = scalar_lea.hbm %s1055_s0, 16 }
  0x18   : > { %p791_p7 = scmp.lt.s32.totalorder %s784_s17, %s1055_s0  ;;  %p792_p8 = scmp.lt.s32.totalorder %s790_s23, %s785_s18 }
  0x19   : > { %p788_p3 = pnand %p787_p2, %p786_p0 }
  0x1a   : > { %p793_p9 = por %p792_p8, %p791_p7 }
  0x1b   : > { %p789_p6 = pneg %p788_p3 }
  0x1d   : > { %p794_p10 = pnand %p793_p9, %p789_p6 }
  0x1f   : > { %797 = shalt.err (!%p794_p10)
}
  0x20   : > { %711 = dma.hbm_to_vmem [thread:$0]  (!%p962_p13), %s257_s28, 128, %s259_s12, %s247_s13, %s854_s15, %s854_s15, %s855_s16  }
  0x21   : > { %270 = sbr.rel (%p933_p5) target bundleno = 476 (0x1dc), region = 48  ;;  %s272_s20 = sand.u32 (!%p933_p5), 1, %s843_s25  }
  0x22   : > { %s608_s9 = sshll.u32 (!%p933_p5), %s272_s20, 3  ;;  %s273_s22 = scalar_lea.sflag (!%p933_p5), [#allocation3], %s272_s20 }
  0x23   : > { %s276_s21 = scalar_lea.vmem (!%p933_p5), [#allocation2], %s608_s9 }
  0x26   : > { %830 = dma.done.wait (%p926_p4), %s273_s22, 128  }
  0x27   : > { %832 = vsyncadd (%p926_p4), %s273_s22, 4294967168 }
  0x28   : > { %834 = dma.done.wait (%p918_p1), [#allocation5], 384  }
  0x29   : > { %836 = vsyncadd (%p918_p1), [#allocation5], 4294966912  ;;  %v685_v0 = vld [vmem:[#allocation4 + $0x10] sm:$0xff]  ;;  %v691_v1 = vld [vmem:[%s1058_s3 + $0x28] sm:$0xff]  ;;  %vm356_vm0 = vcmask 392192   ;;  %vm429_vm1 = vcmask 785408  }
  0x2a   : > { %365 = vmatpush.bf16.msra.mxu0 %v685_v0  ;;  %v684_v2 = vld [vmem:[#allocation4 + $0x8] sm:$0xff]  ;;  %435 = vmatpush.bf16.msra.mxu1 %v691_v1  ;;  %v690_v3 = vld [vmem:[%s1058_s3 + $0x20] sm:$0xff]  ;;  %v683_v4 = vld [vmem:[#allocation4] sm:$0xff]  ;;  %s1068_s18 = sadd.s32 4294967295, %s851_s27   ;;  %vm519_vm2 = vcmask 162816  }
  0x2b   : > { %v682_v5 = vld [vmem:[%s276_s21] sm:$0xff]  ;;  %v689_v6 = vld [vmem:[%s1058_s3 + $0x18] sm:$0xff]  ;;  %v688_v7 = vld [vmem:[%s1058_s3 + $0x10] sm:$0xff]  ;;  %s610_s23 = sshll.u32 %s1068_s18, 1 }
  0x2c   : > { %v687_v8 = vld [vmem:[%s1058_s3 + $0x8] sm:$0xff]  ;;  %v686_v9 = vld [vmem:[%s1058_s3] sm:$0xff]  ;;  %v695_v20 = vld [vmem:[%s1060_s5 + $0x18] sm:$0xff]  ;;  %p315_p1 = scmp.lt.s32.totalorder %s610_s23, 3 }
  0x2d   : > { %v697_v10 = vld [vmem:[%s1060_s5 + $0x28] sm:$0xff]  ;;  %v696_v11 = vld [vmem:[%s1060_s5 + $0x20] sm:$0xff]  ;;  %v694_v21 = vld [vmem:[%s1060_s5 + $0x10] sm:$0xff] }
  0x2e   : > { %366 = vmatpush.bf16.msra.mxu0 %v684_v2  ;;  %436 = vmatpush.bf16.msra.mxu1 %v690_v3  ;;  %v750_v13 = vld [vmem:[%s1057_s2] ss:$0 sm:$0xff]  ;;  %v693_v22 = vld [vmem:[%s1060_s5 + $0x8] sm:$0xff]  ;;  %s1074_s23 = smov (!%p315_p1, %s610_s23), 3 }
  0x2f   : > { %507 = vmatpush.bf16.msra.mxu2 %v697_v10  ;;  %v692_v23 = vld [vmem:[%s1060_s5] sm:$0xff]  ;;  %s611_s24 = sshll.u32 %s1074_s23, 3 }
  0x30   : > { %v751_v25 = vld [vmem:[%s1059_s4] ss:$0 sm:$0xff]  ;;  %s318_s21 = scalar_lea.vmem %s1062_s7, %s611_s24 }
  0x31   : > { %v752_v32 = vld [vmem:[%s1061_s6] ss:$0 sm:$0xff] }
  0x32   : > { %367 = vmatpush.bf16.msra.mxu0 %v683_v4  ;;  %437 = vmatpush.bf16.msra.mxu1 %v689_v6 }
  0x33   : > { %508 = vmatpush.bf16.msra.mxu2 %v696_v11 }
  0x35   : > { %628 = vmatmul.msk.bf16.vlgmr.msra.gmra.mxu0 %vm356_vm0, %v682_v5 }
  0x36   : > { %438 = vmatpush.bf16.msra.mxu1 %v688_v7 }
  0x37   : > { %509 = vmatpush.bf16.msra.mxu2 %v695_v20 }
  0x3a   : > { %439 = vmatpush.bf16.msra.mxu1 %v687_v8 }
  0x3b   : > { %510 = vmatpush.bf16.msra.mxu2 %v694_v21 }
  0x3e   : > { %440 = vmatpush.bf16.msra.mxu1 %v686_v9 }
  0x3f   : > { %511 = vmatpush.bf16.msra.mxu2 %v693_v22 }
  0x43   : > { %512 = vmatpush.bf16.msra.mxu2 %v692_v23 }
  0xb2   : > { %v369_v12 = vpop.f32.mrf.mxu0 }
  0xb3   : > { %v370_v14 = vadd.f32 %v750_v13, %v369_v12 }
  0xb5   : > { %v374_v17 = vmax.f32 %v370_v14, 0.0 }
  0xba   : > { %v371_v15 = vpop.f32.mrf.mxu0 }
  0xbb   : > { %v372_v16 = vadd.f32 %v750_v13, %v371_v15 }
  0xbd   : > { %v375_v18 = vmax.f32 %v372_v16, 0.0 }
  0xbf   : > { %v376_v19 = vpack.c.bf16 %v375_v18, %v374_v17 }
  0xc1   : > { %653 = vmatmul.msk.bf16.vlgmr.msra.gmra.mxu1 %vm429_vm1, %v376_v19 }
 0x13e   : > { %v442_v24 = vpop.f32.mrf.mxu1 }
 0x13f   : > { %v443_v26 = vadd.f32 %v751_v25, %v442_v24 }
 0x141   : > { %v447_v29 = vmax.f32 %v443_v26, 0.0 }
 0x146   : > { %v444_v27 = vpop.f32.mrf.mxu1 }
 0x147   : > { %v445_v28 = vadd.f32 %v751_v25, %v444_v27 }
 0x149   : > { %v448_v30 = vmax.f32 %v445_v28, 0.0 }
 0x14b   : > { %v449_v31 = vpack.c.bf16 %v448_v30, %v447_v29 }
 0x14d   : > { %678 = vmatmul.msk.bf16.vlgmr.msra.gmra.mxu2 %vm429_vm1, %v449_v31 }
 0x1d0   : > { %v514_v33 = vpop.f32.mrf.mxu2 }
 0x1d1   : > { %v515_v34 = vadd.f32 %v752_v32, %v514_v33 }
 0x1d3   : > { %520 = vst.msk [vmem:[%s318_s21] sm:$0xff] %vm519_vm2, %v515_v34 }
 0x1d8   : > { %v516_v35 = vpop.f32.mrf.mxu2 }
 0x1d9   : > { %v517_v36 = vadd.f32 %v752_v32, %v516_v35 }
 0x1db   : > { %521 = vst.msk [vmem:[%s318_s21 + $0x8] sm:$0xff] %vm519_vm2, %v517_v36 }
 0x1dc PF: > { %p18_p4 = scmp.ge.s32.totalorder %s942_s14, 4   ;;  %s1069_s24 = smov %s843_s25 }
 0x1dd   : > { %s1070_s25 = smov %s847_s26  ;;  %s1071_s26 = smov %s955_s19 }
 0x1de   : > { %s1072_s27 = smov %s942_s14  ;;  %20 = sbr.rel (!%p18_p4) target bundleno = 4 (0x4), region = 92 }
 0x1e3   :  { %544 = vsyncpa [#allocation3], 1 }
 0x1e4   :  { %546 = vsyncpa [#allocation3 + $0x1], 1 }
 0x1e5   :  { %547 = vsyncpa [#allocation5], 1 }

</bundles_post_ra>
